<compile_context>
chip_gen: v5e
topology: v5e:2x2
jax: 0.10.0
libtpu: 0.0.40
codegen_flags: <defaults>
</compile_context>

<pallas_src>
import jax
import jax.numpy as jnp
from jax.experimental import pallas as pl
from jax.experimental.pallas import tpu as pltpu


def _simplex_dense_kernel(g_ref, x_ref, y_ref, wt_ref, o_ref):
    # MXU: [TB, D] @ [D, D] (weight pre-transposed in the wrapper), f32 acc.
    y_pooled = jnp.dot(y_ref[...], wt_ref[...],
                       preferred_element_type=jnp.float32)
    g = g_ref[0]
    x = x_ref[...].astype(jnp.float32)
    # g*x + (1-g)*y'  ==  y' + g*(x - y')
    o_ref[...] = (y_pooled + g * (x - y_pooled)).astype(o_ref.dtype)


def _round8_up(n):
    return ((n + 7) // 8) * 8


def _vmem_capacity_bytes():
    try:
        return int(pltpu.get_tpu_info().vmem_capacity_bytes)
    except Exception:
        return 64 << 20  # conservative fallback (v7x per-TC VMEM)


def _choose_batch_tile(B, D, in_itemsize, out_itemsize, vmem_capacity):
    """Batch tile: big enough to amortize ~0.35us/step overhead, small enough
    that (resident weight + double-buffered x/y/out tiles + f32 intermediates)
    fits a generation-aware VMEM budget, and small enough that there are at
    least 2 grid steps (v7x megacore sharding / writeback overlap)."""
    if B <= 8:
        return B                                   # single full-extent block
    budget = int(vmem_capacity * 0.45)             # ~57 MiB on 128 MiB parts, ~28 MiB on v7x
    w_bytes = D * D * in_itemsize                  # resident weight, single copy
    per_row = (2 * 2 * D * in_itemsize             # x, y tiles, double-buffered
               + 2 * D * out_itemsize              # out tile, double-buffered
               + 3 * D * 4)                        # f32 intermediates: y', x_f32, z
    avail = max(budget - w_bytes, per_row * 8)
    tb = avail // per_row
    tb = max(8, (tb // 8) * 8)                     # sublane-aligned
    tb = min(tb, 1024)                             # diminishing returns past ~1K rows
    # Guarantee >= 2 grid steps so both v7x TensorCores get work.
    tb = min(tb, max(8, _round8_up(-(-B // 2))))
    return max(8, (tb // 8) * 8)


def simplex_dense(x, y, weight, g):
    """x: [..., D], y: [..., D], weight: [D, D] (PyTorch Linear [out, in])."""
    orig_shape = x.shape
    D = orig_shape[-1]
    x2 = x.reshape(-1, D)
    y2 = y.reshape(-1, D)
    B = x2.shape[0]
    in_isz = jnp.dtype(x2.dtype).itemsize
    out_isz = in_isz

    cap = _vmem_capacity_bytes()
    tb = _choose_batch_tile(B, D, in_isz, out_isz, cap)
    num_tiles = pl.cdiv(B, tb)                     # ragged tail handled by masking

    # One D^2 transpose per call (outside the kernel); kernel then uses the
    # canonical MXU layout y @ W^T with contraction on RHS dim 0.
    w_t = weight.T

    g_arr = jnp.asarray([g], dtype=jnp.float32)

    # VMEM requirement: resident weight (single copy) + double-buffered
    # x/y/out tiles + f32 intermediates.
    needed = (D * D * in_isz
              + 2 * 2 * tb * D * in_isz
              + 2 * tb * D * out_isz
              + 3 * tb * D * 4)
    vmem_limit = int(min(max(int(needed * 1.5), 16 << 20), int(cap * 0.75)))

    cost = pl.CostEstimate(
        flops=2 * B * D * D,
        transcendentals=0,
        bytes_accessed=(3 * B * D + D * D) * in_isz,
    )

    out = pl.pallas_call(
        _simplex_dense_kernel,
        out_shape=jax.ShapeDtypeStruct((B, D), x2.dtype),
        grid_spec=pl.GridSpec(
            grid=(num_tiles,),
            in_specs=[
                pl.BlockSpec(memory_space=pltpu.MemorySpace.SMEM),   # g scalar
                pl.BlockSpec((tb, D), lambda i: (i, 0)),             # x tile
                pl.BlockSpec((tb, D), lambda i: (i, 0)),             # y tile
                # Whole pre-transposed weight resident in VMEM, single copy
                # (unblocked operand => not double-buffered by the pipeline).
                pl.BlockSpec(memory_space=pltpu.MemorySpace.VMEM),
            ],
            out_specs=pl.BlockSpec((tb, D), lambda i: (i, 0)),
        ),
        compiler_params=pltpu.CompilerParams(
            dimension_semantics=("parallel",),     # batch rows are independent
            vmem_limit_bytes=vmem_limit,
        ),
        cost_estimate=cost,
    )(g_arr, x2, y2, w_t)

    return out.reshape(orig_shape)


def simplex_dense_ref(x, y, weight, g):
    y_pooled = y @ weight.T
    return g * x + (1.0 - g) * y_pooled


if __name__ == "__main__":
    D = 32                    # emb_out_size (small test shape)
    g = 0.7

    key = jax.random.PRNGKey(0)
    kx, ky, kw, kx2, ky2 = jax.random.split(key, 5)

    # Deterministic xavier_uniform_-style init for the Linear weight [D, D].
    bound = (6.0 / (D + D)) ** 0.5
    weight = jax.random.uniform(kw, (D, D), dtype=jnp.float32,
                                minval=-bound, maxval=bound)

    # Case 1: small, tile-aligned batch.
    B = 8
    x = jax.random.normal(kx, (B, D), dtype=jnp.float32)
    y = jax.random.normal(ky, (B, D), dtype=jnp.float32)
    out = jax.block_until_ready(simplex_dense(x, y, weight, g))
    ref = simplex_dense_ref(x, y, weight, g)
    assert out.shape == (B, D)
    assert jnp.allclose(out, ref, atol=1e-5, rtol=1e-5), "mismatch (aligned batch)"

    # Case 2: ragged batch (exercises the masked partial last block, no pad/slice).
    B2 = 13
    x2 = jax.random.normal(kx2, (B2, D), dtype=jnp.float32)
    y2 = jax.random.normal(ky2, (B2, D), dtype=jnp.float32)
    out2 = jax.block_until_ready(simplex_dense(x2, y2, weight, g))
    ref2 = simplex_dense_ref(x2, y2, weight, g)
    assert out2.shape == (B2, D)
    assert jnp.allclose(out2, ref2, atol=1e-5, rtol=1e-5), "mismatch (ragged batch)"

    print("KERNEL_OK")
</pallas_src>

<mosaic_0001>
module attributes {stable_mosaic.version = 11 : i64} {
  func.func @_simplex_dense_kernel(%arg0: i32, %arg1: memref<1xf32, #tpu.memory_space<smem>>, %arg2: memref<8x32xf32, #tpu.memory_space<vmem>>, %arg3: memref<8x32xf32, #tpu.memory_space<vmem>>, %arg4: memref<32x32xf32, #tpu.memory_space<vmem>>, %arg5: memref<8x32xf32, #tpu.memory_space<vmem>>) attributes {dimension_semantics = [#tpu.dimension_semantics<parallel>], iteration_bounds = array<i64: 1>, scalar_prefetch = 0 : i64, scratch_operands = 0 : i64, tpu.core_type = #tpu.core_type<tc>, window_params = [{transform_indices = @transform_0, window_bounds = array<i64: 1>}, {transform_indices = @transform_1, window_bounds = array<i64: 8, 32>}, {transform_indices = @transform_2, window_bounds = array<i64: 8, 32>}, {pipeline_mode = #tpu.pipeline_mode<synchronous>, transform_indices = @transform_3, window_bounds = array<i64: 32, 32>}, {transform_indices = @transform_4, window_bounds = array<i64: 8, 32>}]} {
    %c0 = arith.constant 0 : index
    %c0_0 = arith.constant 0 : index
    %0 = vector.load %arg3[%c0, %c0_0] : memref<8x32xf32, #tpu.memory_space<vmem>>, vector<8x32xf32>
    %c0_1 = arith.constant 0 : index
    %c0_2 = arith.constant 0 : index
    %1 = vector.load %arg4[%c0_1, %c0_2] : memref<32x32xf32, #tpu.memory_space<vmem>>, vector<32x32xf32>
    %cst = arith.constant dense<0.000000e+00> : vector<8x32xf32>
    %2 = tpu.matmul %0, %1, %cst {dimension_numbers = #tpu.dot_dimension_numbers<[1], [0], [0], [1], [0, 0, 1, 1], [], []>} : vector<8x32xf32>, vector<32x32xf32>, vector<8x32xf32> -> vector<8x32xf32>
    %c0_3 = arith.constant 0 : index
    %3 = memref.load %arg1[%c0_3] : memref<1xf32, #tpu.memory_space<smem>>
    %c0_4 = arith.constant 0 : index
    %c0_5 = arith.constant 0 : index
    %4 = vector.load %arg2[%c0_4, %c0_5] : memref<8x32xf32, #tpu.memory_space<vmem>>, vector<8x32xf32>
    %5 = arith.subf %4, %2 : vector<8x32xf32>
    %6 = vector.broadcast %3 : f32 to vector<8x32xf32>
    %7 = arith.mulf %6, %5 : vector<8x32xf32>
    %8 = arith.addf %2, %7 : vector<8x32xf32>
    %c0_6 = arith.constant 0 : index
    %c0_7 = arith.constant 0 : index
    %9 = vector.load %arg5[%c0_6, %c0_7] : memref<8x32xf32, #tpu.memory_space<vmem>>, vector<8x32xf32>
    tpu.vector_store %arg5[%c0_6, %c0_7], %8 {strides = array<i32>} : memref<8x32xf32, #tpu.memory_space<vmem>>, vector<8x32xf32>,
    return
  }
  func.func @transform_0(%arg0: i32) -> i32 {
    %c0_i32 = arith.constant 0 : i32
    %c0_i32_0 = arith.constant 0 : i32
    return %c0_i32 : i32
  }
  func.func @transform_1(%arg0: i32) -> (i32, i32) {
    %c0_i32 = arith.constant 0 : i32
    %c0_i32_0 = arith.constant 0 : i32
    return %arg0, %c0_i32 : i32, i32
  }
  func.func @transform_2(%arg0: i32) -> (i32, i32) {
    %c0_i32 = arith.constant 0 : i32
    %c0_i32_0 = arith.constant 0 : i32
    return %arg0, %c0_i32 : i32, i32
  }
  func.func @transform_3(%arg0: i32) -> (i32, i32) {
    %c0_i32 = arith.constant 0 : i32
    %c0_i32_0 = arith.constant 0 : i32
    %c0_i32_1 = arith.constant 0 : i32
    return %c0_i32, %c0_i32_0 : i32, i32
  }
  func.func @transform_4(%arg0: i32) -> (i32, i32) {
    %c0_i32 = arith.constant 0 : i32
    %c0_i32_0 = arith.constant 0 : i32
    return %arg0, %c0_i32 : i32, i32
  }
}

</mosaic_0001>

<bundles_post_ra>
// kernel: tpu_custom_call.1
= control target key start
LH: loop header
LB: loop body
LE: loop exit
PB: predicated region body
PF: predicated region fallthrough
CT: control target
= control target key end

     0   :  { %10 = vsyncpa [#allocation4], 0  ;;  %s271_s0 = inlined_call_operand.<no memory space> [shape: f32[1], index: 0, kind: input, shape index: {}]   ;;  %s272_s1 = inlined_call_operand.hbm [shape: f32[8,32], index: 1, kind: input, shape index: {}]   ;;  %s273_s2 = inlined_call_operand.hbm [shape: f32[8,32], index: 2, kind: input, shape index: {}]   ;;  %s274_s3 = inlined_call_operand.hbm [shape: f32[32,32], index: 3, kind: input, shape index: {}]   ;;  %s275_s4 = inlined_call_operand.hbm [shape: f32[8,32], index: 4, kind: output, shape index: {}]  }
   0x1   :  { %11 = vsyncpa [#allocation7], 0  ;;  %s31_s17 = sshll.u32 %s273_s2, 4  ;;  %s32_s17 = int_to_ptr.hbm [resolvable:$true] %s31_s17 }
   0x2   :  { %12 = vsyncpa [#allocation5], 0  ;;  %s225_s18 = smov [#allocation6]   ;;  %s20_s22 = sshll.u32 %s272_s1, 4  ;;  %s21_s22 = int_to_ptr.hbm [resolvable:$true] %s20_s22 }
   0x3   :  { %s33_s19 = sshll.u32 %s225_s18, 4  ;;  %s226_s23 = smov [#allocation3]   ;;  %s34_s19 = int_to_ptr.vmem [resolvable:$true] %s33_s19 }
   0x4   :  { %36 = dma.hbm_to_vmem [thread:$0]  %s32_s17, 128, %s34_s19, [#allocation7]  }
   0x5   :  { %s22_s24 = sshll.u32 %s226_s23, 4  ;;  %s41_s27 = sshll.u32 %s274_s3, 4  ;;  %s23_s24 = int_to_ptr.vmem [resolvable:$true] %s22_s24  ;;  %s42_s27 = int_to_ptr.hbm [resolvable:$true] %s41_s27 }
   0x6   :  { %25 = dma.hbm_to_vmem [thread:$0]  %s21_s22, 128, %s23_s24, [#allocation4]  }
   0x7   :  { %s227_s2 = smov [#allocation8]   ;;  %s228_s29 = smov 128  }
   0x8   :  { %s43_s28 = sshll.u32 %s227_s2, 4  ;;  %s229_s30 = smov 8   ;;  %s44_s28 = int_to_ptr.vmem [resolvable:$true] %s43_s28 }
   0x9   :  { %49 = dma.hbm_to_vmem [thread:$0]  %s42_s27, 512, %s44_s28, [#allocation7], %s228_s29, %s228_s29, %s229_s30  }
   0xa   :  { %219 = dma.done.wait [#allocation4], 128  }
   0xb   :  { %220 = vsyncadd [#allocation4], 4294967168 }
   0xc   :  { %221 = dma.done.wait [#allocation7], 640  }
   0xd   :  { %222 = vsyncadd [#allocation7], 4294966656  ;;  %v66_v0 = vld [vmem:[#allocation8 + $0x18] sm:$0xff]  ;;  %v65_v1 = vld [vmem:[#allocation8 + $0x10] sm:$0xff]  ;;  %vm67_vm0 = vcmask 261120   ;;  %v94_v7 = vstv %s271_s0  ;;  %s230_s5 = smov [#allocation9]  }
   0xe   :  { %83 = vmatpush.msra.mxu0 %v66_v0  ;;  %v64_v2 = vld [vmem:[#allocation8 + $0x8] sm:$0xff]  ;;  %v63_v3 = vld [vmem:[#allocation8] sm:$0xff]  ;;  %v62_v4 = vld [vmem:[#allocation6] sm:$0xff]  ;;  %s103_s6 = sshll.u32 %s230_s5, 4  ;;  %s105_s9 = sshll.u32 %s275_s4, 4  ;;  %s104_s6 = int_to_ptr.vmem [resolvable:$true] %s103_s6  ;;  %s106_s9 = int_to_ptr.hbm [resolvable:$true] %s105_s9 }
   0xf   :  { %v92_v5 = vld [vmem:[#allocation3] sm:$0xff] }
  0x10   :  { %84 = vmatpush.msra.mxu0 %v65_v1 }
  0x12   :  { %85 = vmatpush.msra.mxu0 %v64_v2 }
  0x14   :  { %86 = vmatpush.msra.mxu0 %v63_v3 }
  0x15   :  { %116 = vmatmul.msk.f32.vlgmr.msra.gmra.mxu0 %vm67_vm0, %v62_v4 }
  0x92   :  { %v88_v6 = vpop.f32.mrf.mxu0 }
  0x93   :  { %v93_v8 = vsub.f32 %v92_v5, %v88_v6 }
  0x95   :  { %v95_v9 = vmul.f32 %v94_v7, %v93_v8 }
  0x97   :  { %v96_v10 = vadd.f32 %v95_v9, %v88_v6 }
  0x99   :  { %97 = vst.msk [vmem:[#allocation9] sm:$0xff] %vm67_vm0, %v96_v10 }
  0x9a   :  { %108 = dma.vmem_to_hbm [thread:$0]  %s104_s6, 128, %s106_s9, [#allocation5]  }
  0x9b   :  { %223 = dma.done.wait [#allocation5], 128  }
  0x9c   :  { %224 = vsyncadd [#allocation5], 4294967168 }
  0x9d   :  { %113 = vsyncpa [#allocation4], 1 }
  0x9e   :  { %114 = vsyncpa [#allocation7], 1 }
  0x9f   :  { %115 = vsyncpa [#allocation5], 1 }

</bundles_post_ra>
